<compile_context>
chip_gen: v7x
topology: tpu7x:2x2x1
jax: 0.10.0
libtpu: 0.0.40
codegen_flags: <defaults>
</compile_context>

<pallas_src>
import functools

import jax
import jax.numpy as jnp
import numpy as np
from jax import lax
from jax.experimental import pallas as pl
from jax.experimental.pallas import tpu as pltpu

GEM_EPS = 1e-6
BN_EPS = 1e-5
NORM_EPS = 1e-12  # F.normalize default eps


def _gem_kernel(p_ref, x_ref, scale_ref, shift_ref, o_ref, acc_ref, *, hw):
    # p_ref:     (1,) scalar in SMEM
    # x_ref:     (1, C, hw_tile) block, channels on sublanes, spatial on lanes
    # scale_ref: (C, 1)  folded-BN scale = gamma * rsqrt(var + eps)
    # shift_ref: (C, 1)  folded-BN shift = beta - mean * scale
    # o_ref:     (1, C, 1) output block (resident across the spatial-tile axis)
    # acc_ref:   (C, 1) f32 VMEM accumulator of sum(x**p) over spatial
    t = pl.program_id(1)

    @pl.when(t == 0)
    def _():
        acc_ref[...] = jnp.zeros_like(acc_ref)

    x = x_ref[0].astype(jnp.float32)                       # (C, hw_tile)
    p = p_ref[0]

    # --- F.normalize(x, p=2, dim=1): per-pixel L2 norm over channels ---
    sumsq = jnp.sum(x * x, axis=0, keepdims=True)          # (1, hw_tile)
    x = x * lax.rsqrt(jnp.maximum(sumsq, NORM_EPS * NORM_EPS))

    # --- GeM: clamp(min=eps).pow(p), accumulate spatial sum ---
    xc = jnp.maximum(x, GEM_EPS)
    xp = jnp.exp(p * jnp.log(xc))                          # x ** p (x > 0)
    acc_ref[...] += jnp.sum(xp, axis=1, keepdims=True)     # (C, 1)

    @pl.when(t == pl.num_programs(1) - 1)
    def _():
        m = acc_ref[...] * (1.0 / hw)                      # spatial mean, (C, 1)
        g = jnp.exp(jnp.log(m) / p)                        # m ** (1/p)  (m > 0)
        # BatchNorm1d (eval mode), folded into scale/shift.
        g = g * scale_ref[...] + shift_ref[...]
        # Final L2 normalize over the feature dimension.
        s2 = jnp.sum(g * g, axis=0, keepdims=True)         # (1, 1)
        g = g * lax.rsqrt(jnp.maximum(s2, NORM_EPS * NORM_EPS))
        o_ref[0] = g.astype(o_ref.dtype)


def _pick_hw_tile(hw, c, max_hw_tile=None):
    """Largest multiple-of-128 divisor of hw within a ~2 MiB tile budget."""
    budget_elems = (2 * 1024 * 1024) // (4 * c)            # f32 tile budget
    cap = max(128, (budget_elems // 128) * 128)
    if max_hw_tile is not None:
        cap = min(cap, max_hw_tile)
    best = None
    if hw % 128 == 0:
        t = 128
        limit = min(hw, cap)
        while t <= limit:
            if hw % t == 0:
                best = t
            t += 128
    if best is None:
        best = hw       # full-extent block is always a legal block shape
    return best


def gem_forward(x_nchw, p, gamma, beta, running_mean, running_var,
                *, max_hw_tile=None):
    """x_nchw: (B, C, H, W) float32.  Returns (B, C) float32."""
    B, C, H, W = x_nchw.shape
    HW = H * W
    # Contiguous view of NCHW — no HBM transpose traffic.
    x = x_nchw.reshape(B, C, HW)

    # Fold eval-mode BatchNorm1d into scale/shift vectors.
    scale_vec = gamma * lax.rsqrt(running_var + BN_EPS)
    shift_vec = beta - running_mean * scale_vec
    scale = scale_vec.reshape(C, 1).astype(jnp.float32)
    shift = shift_vec.reshape(C, 1).astype(jnp.float32)

    hw_tile = _pick_hw_tile(HW, C, max_hw_tile)
    num_t = HW // hw_tile

    kernel = functools.partial(_gem_kernel, hw=HW)

    out = pl.pallas_call(
        kernel,
        out_shape=jax.ShapeDtypeStruct((B, C, 1), jnp.float32),
        grid=(B, num_t),
        in_specs=[
            pl.BlockSpec(memory_space=pltpu.MemorySpace.SMEM),      # p (1,)
            pl.BlockSpec((1, C, hw_tile), lambda b, t: (b, 0, t)),  # x
            pl.BlockSpec((C, 1), lambda b, t: (0, 0)),              # scale
            pl.BlockSpec((C, 1), lambda b, t: (0, 0)),              # shift
        ],
        out_specs=pl.BlockSpec((1, C, 1), lambda b, t: (b, 0, 0)),
        scratch_shapes=[pltpu.VMEM((C, 1), jnp.float32)],
        compiler_params=pltpu.CompilerParams(
            dimension_semantics=("parallel", "arbitrary"),
            vmem_limit_bytes=32 * 1024 * 1024),
    )(p, x, scale, shift)
    return out.reshape(B, C)


def _reference(x_nchw, p, gamma, beta, running_mean, running_var):
    # Pure-JAX reference mirroring the PyTorch forward (eval-mode BN).
    x = x_nchw.astype(jnp.float32)
    nrm = jnp.sqrt(jnp.sum(x * x, axis=1, keepdims=True))
    x = x / jnp.maximum(nrm, NORM_EPS)
    xp = jnp.maximum(x, GEM_EPS) ** p[0]
    g = jnp.mean(xp, axis=(2, 3)) ** (1.0 / p[0])               # (B, C)
    g = (g - running_mean) * gamma / jnp.sqrt(running_var + BN_EPS) + beta
    n2 = jnp.sqrt(jnp.sum(g * g, axis=1, keepdims=True))
    return g / jnp.maximum(n2, NORM_EPS)


if __name__ == "__main__":
    key = jax.random.PRNGKey(0)

    # --- Config 1: module-default init, multi-tile spatial accumulation ---
    B, C, H, W = 2, 4, 16, 16
    k0, key = jax.random.split(key)
    x = jax.random.normal(k0, (B, C, H, W), dtype=jnp.float32)
    p = jnp.array([3.0], dtype=jnp.float32)
    gamma = jnp.ones((C,), dtype=jnp.float32)
    beta = jnp.zeros((C,), dtype=jnp.float32)
    running_mean = jnp.zeros((C,), dtype=jnp.float32)
    running_var = jnp.ones((C,), dtype=jnp.float32)

    out = gem_forward(x, p, gamma, beta, running_mean, running_var,
                      max_hw_tile=128)          # forces 2 spatial tiles
    out = jax.block_until_ready(out)
    ref = _reference(x, p, gamma, beta, running_mean, running_var)
    np.testing.assert_allclose(np.asarray(out), np.asarray(ref),
                               rtol=5e-4, atol=1e-5)

    # --- Config 2: wider channel dim, non-trivial BN params, odd batch ---
    B2, C2, H2, W2 = 3, 128, 8, 32
    k1, k2, k3, k4, k5, key = jax.random.split(key, 6)
    x2 = jax.random.normal(k1, (B2, C2, H2, W2), dtype=jnp.float32)
    gamma2 = 1.0 + 0.1 * jax.random.normal(k2, (C2,), dtype=jnp.float32)
    beta2 = 0.1 * jax.random.normal(k3, (C2,), dtype=jnp.float32)
    mean2 = 0.1 * jax.random.normal(k4, (C2,), dtype=jnp.float32)
    var2 = 1.0 + 0.1 * jnp.abs(jax.random.normal(k5, (C2,), dtype=jnp.float32))

    out2 = gem_forward(x2, p, gamma2, beta2, mean2, var2, max_hw_tile=128)
    out2 = jax.block_until_ready(out2)
    ref2 = _reference(x2, p, gamma2, beta2, mean2, var2)
    np.testing.assert_allclose(np.asarray(out2), np.asarray(ref2),
                               rtol=5e-4, atol=1e-5)

    print("KERNEL_OK")
</pallas_src>

<mosaic_0001>
module attributes {stable_mosaic.version = 11 : i64} {
  func.func @_gem_kernel(%arg0: i32, %arg1: i32, %arg2: memref<1xf32, #tpu.memory_space<smem>>, %arg3: memref<1x4x128xf32, #tpu.memory_space<vmem>>, %arg4: memref<4x1xf32, #tpu.memory_space<vmem>>, %arg5: memref<4x1xf32, #tpu.memory_space<vmem>>, %arg6: memref<1x4x1xf32, #tpu.memory_space<vmem>>, %arg7: memref<4x1xf32, #tpu.memory_space<vmem>>) attributes {dimension_semantics = [#tpu.dimension_semantics<parallel>, #tpu.dimension_semantics<arbitrary>], iteration_bounds = array<i64: 2, 2>, scalar_prefetch = 0 : i64, scratch_operands = 1 : i64, tpu.core_type = #tpu.core_type<tc>, window_params = [{transform_indices = @transform_0, window_bounds = array<i64: 1>}, {transform_indices = @transform_1, window_bounds = array<i64: 1, 4, 128>}, {pipeline_mode = #tpu.pipeline_mode<synchronous>, transform_indices = @transform_2, window_bounds = array<i64: 4, 1>}, {pipeline_mode = #tpu.pipeline_mode<synchronous>, transform_indices = @transform_3, window_bounds = array<i64: 4, 1>}, {transform_indices = @transform_4, window_bounds = array<i64: 1, 4, 1>}]} {
    %c0_i32 = arith.constant 0 : i32
    %0 = arith.cmpi eq, %arg1, %c0_i32 : i32
    %1 = arith.extui %0 : i1 to i32
    %c0_i32_0 = arith.constant 0 : i32
    %2 = arith.cmpi ne, %1, %c0_i32_0 : i32
    scf.if %2 {
      %cst_12 = arith.constant 0.000000e+00 : f32
      %28 = vector.broadcast %cst_12 : f32 to vector<4x1xf32>
      %c0_13 = arith.constant 0 : index
      %c0_14 = arith.constant 0 : index
      %29 = vector.load %arg7[%c0_13, %c0_14] : memref<4x1xf32, #tpu.memory_space<vmem>>, vector<4x1xf32>
      tpu.vector_store %arg7[%c0_13, %c0_14], %28 {strides = array<i32>} : memref<4x1xf32, #tpu.memory_space<vmem>>, vector<4x1xf32>,
    } else {
    }
    %c0 = arith.constant 0 : index
    %c0_1 = arith.constant 0 : index
    %c0_2 = arith.constant 0 : index
    %3 = vector.load %arg3[%c0, %c0_1, %c0_2] : memref<1x4x128xf32, #tpu.memory_space<vmem>>, vector<1x4x128xf32>
    %4 = vector.shape_cast %3 : vector<1x4x128xf32> to vector<4x128xf32>
    %c0_3 = arith.constant 0 : index
    %5 = memref.load %arg2[%c0_3] : memref<1xf32, #tpu.memory_space<smem>>
    %6 = arith.mulf %4, %4 : vector<4x128xf32>
    %cst = arith.constant dense<0.000000e+00> : vector<128xf32>
    %7 = vector.multi_reduction <add>, %6, %cst [0] : vector<4x128xf32> to vector<128xf32>
    %8 = vector.shape_cast %7 : vector<128xf32> to vector<1x128xf32>
    %cst_4 = arith.constant 1.000000e-24 : f32
    %9 = vector.broadcast %cst_4 : f32 to vector<1x128xf32>
    %10 = arith.maximumf %8, %9 : vector<1x128xf32>
    %11 = math.rsqrt %10 : vector<1x128xf32>
    %12 = vector.broadcast %11 : vector<1x128xf32> to vector<4x128xf32>
    %13 = arith.mulf %4, %12 : vector<4x128xf32>
    %cst_5 = arith.constant 9.99999997E-7 : f32
    %14 = vector.broadcast %cst_5 : f32 to vector<4x128xf32>
    %15 = arith.maximumf %13, %14 : vector<4x128xf32>
    %16 = math.log %15 : vector<4x128xf32>
    %17 = vector.broadcast %5 : f32 to vector<4x128xf32>
    %18 = arith.mulf %17, %16 : vector<4x128xf32>
    %19 = math.exp %18 : vector<4x128xf32>
    %c0_6 = arith.constant 0 : index
    %c0_7 = arith.constant 0 : index
    %20 = vector.load %arg7[%c0_6, %c0_7] : memref<4x1xf32, #tpu.memory_space<vmem>>, vector<4x1xf32>
    %cst_8 = arith.constant dense<0.000000e+00> : vector<4xf32>
    %21 = vector.multi_reduction <add>, %19, %cst_8 [1] : vector<4x128xf32> to vector<4xf32>
    %22 = vector.shape_cast %21 : vector<4xf32> to vector<4x1xf32>
    %23 = arith.addf %20, %22 : vector<4x1xf32>
    %c0_9 = arith.constant 0 : index
    %c0_10 = arith.constant 0 : index
    %24 = vector.load %arg7[%c0_9, %c0_10] : memref<4x1xf32, #tpu.memory_space<vmem>>, vector<4x1xf32>
    tpu.vector_store %arg7[%c0_9, %c0_10], %23 {strides = array<i32>} : memref<4x1xf32, #tpu.memory_space<vmem>>, vector<4x1xf32>,
    %c1_i32 = arith.constant 1 : i32
    %25 = arith.cmpi eq, %arg1, %c1_i32 : i32
    %26 = arith.extui %25 : i1 to i32
    %c0_i32_11 = arith.constant 0 : i32
    %27 = arith.cmpi ne, %26, %c0_i32_11 : i32
    scf.if %27 {
      %c0_12 = arith.constant 0 : index
      %c0_13 = arith.constant 0 : index
      %28 = vector.load %arg7[%c0_12, %c0_13] : memref<4x1xf32, #tpu.memory_space<vmem>>, vector<4x1xf32>
      %cst_14 = arith.constant 3.906250e-03 : f32
      %29 = vector.broadcast %cst_14 : f32 to vector<4x1xf32>
      %30 = arith.mulf %28, %29 : vector<4x1xf32>
      %31 = math.log %30 : vector<4x1xf32>
      %32 = vector.broadcast %5 : f32 to vector<4x1xf32>
      %33 = arith.divf %31, %32 : vector<4x1xf32>
      %34 = math.exp %33 : vector<4x1xf32>
      %c0_15 = arith.constant 0 : index
      %c0_16 = arith.constant 0 : index
      %35 = vector.load %arg4[%c0_15, %c0_16] : memref<4x1xf32, #tpu.memory_space<vmem>>, vector<4x1xf32>
      %36 = arith.mulf %34, %35 : vector<4x1xf32>
      %c0_17 = arith.constant 0 : index
      %c0_18 = arith.constant 0 : index
      %37 = vector.load %arg5[%c0_17, %c0_18] : memref<4x1xf32, #tpu.memory_space<vmem>>, vector<4x1xf32>
      %38 = arith.addf %36, %37 : vector<4x1xf32>
      %39 = arith.mulf %38, %38 : vector<4x1xf32>
      %cst_19 = arith.constant dense<0.000000e+00> : vector<1xf32>
      %40 = vector.multi_reduction <add>, %39, %cst_19 [0] : vector<4x1xf32> to vector<1xf32>
      %41 = vector.shape_cast %40 : vector<1xf32> to vector<1x1xf32>
      %cst_20 = arith.constant 1.000000e-24 : f32
      %42 = vector.broadcast %cst_20 : f32 to vector<1x1xf32>
      %43 = arith.maximumf %41, %42 : vector<1x1xf32>
      %44 = math.rsqrt %43 : vector<1x1xf32>
      %45 = vector.broadcast %44 : vector<1x1xf32> to vector<4x1xf32>
      %46 = arith.mulf %38, %45 : vector<4x1xf32>
      %c0_21 = arith.constant 0 : index
      %c0_22 = arith.constant 0 : index
      %c0_23 = arith.constant 0 : index
      %47 = vector.load %arg6[%c0_21, %c0_22, %c0_23] : memref<1x4x1xf32, #tpu.memory_space<vmem>>, vector<1x4x1xf32>
      %48 = vector.shape_cast %47 : vector<1x4x1xf32> to vector<4x1xf32>
      %49 = vector.shape_cast %46 : vector<4x1xf32> to vector<1x4x1xf32>
      tpu.vector_store %arg6[%c0_21, %c0_22, %c0_23], %49 {strides = array<i32>} : memref<1x4x1xf32, #tpu.memory_space<vmem>>, vector<1x4x1xf32>,
    } else {
    }
    return
  }
  func.func @transform_0(%arg0: i32, %arg1: i32) -> i32 {
    %c0_i32 = arith.constant 0 : i32
    %c0_i32_0 = arith.constant 0 : i32
    return %c0_i32 : i32
  }
  func.func @transform_1(%arg0: i32, %arg1: i32) -> (i32, i32, i32) {
    %c0_i32 = arith.constant 0 : i32
    %c0_i32_0 = arith.constant 0 : i32
    return %arg0, %c0_i32, %arg1 : i32, i32, i32
  }
  func.func @transform_2(%arg0: i32, %arg1: i32) -> (i32, i32) {
    %c0_i32 = arith.constant 0 : i32
    %c0_i32_0 = arith.constant 0 : i32
    %c0_i32_1 = arith.constant 0 : i32
    return %c0_i32, %c0_i32_0 : i32, i32
  }
  func.func @transform_3(%arg0: i32, %arg1: i32) -> (i32, i32) {
    %c0_i32 = arith.constant 0 : i32
    %c0_i32_0 = arith.constant 0 : i32
    %c0_i32_1 = arith.constant 0 : i32
    return %c0_i32, %c0_i32_0 : i32, i32
  }
  func.func @transform_4(%arg0: i32, %arg1: i32) -> (i32, i32, i32) {
    %c0_i32 = arith.constant 0 : i32
    %c0_i32_0 = arith.constant 0 : i32
    %c0_i32_1 = arith.constant 0 : i32
    return %arg0, %c0_i32, %c0_i32_0 : i32, i32, i32
  }
}

</mosaic_0001>

<bundles_post_ra>
// kernel: tpu_custom_call.1
= control target key start
LH: loop header
LB: loop body
LE: loop exit
PB: predicated region body
PF: predicated region fallthrough
CT: control target
= control target key end

     0   :  { %s764_s0 = inlined_call_operand.<no memory space> [shape: f32[1], index: 0, kind: input, shape index: {}]   ;;  %s765_s1 = inlined_call_operand.hbm [shape: f32[2,4,256], index: 1, kind: input, shape index: {}]   ;;  %s766_s2 = inlined_call_operand.vmem [shape: f32[4,1], index: 2, kind: input, shape index: {}]   ;;  %s767_s3 = inlined_call_operand.vmem [shape: f32[4,1], index: 3, kind: input, shape index: {}]   ;;  %s768_s4 = inlined_call_operand.vmem [shape: f32[2,4,1], index: 4, kind: output, shape index: {}]  }
   0x1   :  { %9 = sst [smem:[#allocation3]] %s764_s0 }
   0x2   :  { %10 = vsyncpa [#allocation5], 0 }
   0x3   :  { %12 = vsyncpa [#allocation5 + $0x1], 0  ;;  %s598_s17 = smov 0   ;;  %s600_s18 = smov 0  }
   0x4   :  { %s602_s19 = smov 0   ;;  %s604_s20 = smov 0  }
   0x5   :  { %s606_s21 = smov 0   ;;  %s608_s22 = smov 0  }
   0x6   :  { %s610_s23 = smov 0   ;;  %s612_s24 = smov 0  }
   0x7 LB: > { %s370_s0 = sadd.s32 4294967295, %s566_s24   ;;  %s27_s25 = sadd.s32 1, %s558_s22  ;;  %s566_s24 = sphi %s612_s24, %s18_s24   ;;  %s562_s23 = sphi %s610_s23, %s780_s23   ;;  %s558_s22 = sphi %s608_s22, %s779_s22   ;;  %s554_s21 = sphi %s606_s21, %s778_s21   ;;  %s550_s20 = sphi %s604_s20, %s777_s20   ;;  %s546_s19 = sphi %s602_s19, %s776_s19   ;;  %s542_s18 = sphi %s600_s18, %s775_s18   ;;  %s538_s17 = sphi %s598_s17, %s774_s17  }
   0x8   : > { %p28_p0 = scmp.ge.s32.totalorder %s27_s25, 2  ;;  %s30_s26 = sadd.s32 1, %s562_s23 }
   0x9   : > { %s60_s27 = sadd.s32 1, %s546_s19  ;;  %p67_p1 = scmp.ne.s32.totalorder %s546_s19, %s542_s18 }
   0xa   : > { %s782_s25 = smov (%p28_p0, %s27_s25), 0  ;;  %s784_s26 = smov (!%p28_p0, %s30_s26), %s562_s23 }
   0xb   : > { %s56_s28 = ssub.s32 %s558_s22, %s782_s25  ;;  %p68_p2 = scmp.eq.s32.totalorder %s566_s24, 0 }
   0xc   : > { %p32_p3 = scmp.ge.s32.totalorder %s784_s26, 2  ;;  %p73_p4 = scmp.ne.s32.totalorder %s542_s18, %s538_s17 }
   0xd   : > { %p649_p5 = por %p68_p2, %p67_p1  ;;  %p74_p6 = scmp.eq.s32.totalorder %s370_s0, 0 }
   0xe   : > { %s786_s26 = smov (%p32_p3, %s784_s26), 0  ;;  %p390_p8 = scmp.lt.s32.totalorder %s566_s24, 4 }
   0xf   : > { %p655_p7 = por %p74_p6, %p73_p4  ;;  %s55_s5 = ssub.s32 %s562_s23, %s786_s26 }
  0x10   : > { %s57_s6 = sor.u32 %s56_s28, %s55_s5  ;;  %s174_s7 = sand.u32 1, %s546_s19  }
  0x11   : > { %p58_p9 = scmp.eq.s32.totalorder %s57_s6, 0  ;;  %s374_s8 = sshll.u32 %s174_s7, 2 }
  0x12   : > { %s375_s9 = sshll.u32 %s562_s23, 1  ;;  %s178_s13 = scalar_lea.vmem [#allocation4], %s374_s8 }
  0x13   : > { %s665_s10 = scalar_select %p58_p9, %s546_s19, %s60_s27  }
  0x14   : > { %s183_s11 = sadd.s32 %s558_s22, %s375_s9  ;;  %s187_s14 = sshll.u32 %s178_s13, 4  ;;  %s673_s14 = int_to_ptr.vmem [resolvable:$true] %s187_s14 }
  0x15   : > { %s376_s12 = sshll.u32 %s183_s11, 6  ;;  %p679_p10 = pnand %p390_p8, %p649_p5 }
  0x16   : > { %s671_s17 = scalar_lea.hbm %s765_s1, %s376_s12  ;;  %s175_s27 = scalar_lea.sflag [#allocation5], %s174_s7 }
  0x17   : > { %s470_s28 = scalar_lea.hbm %s671_s17, 64  ;;  %p472_p0 = pneg %p679_p10 }
  0x18   : > { %p471_p13 = scmp.ne.s32.totalorder %s671_s17, %s470_s28  ;;  %s475_s6 = scalar_lea.hbm %s765_s1, 256 }
  0x19   : > { %p476_p3 = scmp.lt.u32.totalorder %s671_s17, %s765_s1  ;;  %p477_p4 = scmp.lt.u32.totalorder %s475_s6, %s470_s28 }
  0x1a   : > { %p473_p1 = pnand %p472_p0, %p471_p13  ;;  %p479_p6 = scmp.lt.u32.totalorder %s470_s28, %s671_s17 }
  0x1b   : > { %p478_p5 = por %p477_p4, %p476_p3 }
  0x1c   : > { %p474_p2 = pneg %p473_p1 }
  0x1d   : > { %p480_p8 = por %p479_p6, %p478_p5 }
  0x1f   : > { %p481_p9 = pnand %p480_p8, %p474_p2 }
  0x21   : > { %484 = shalt.err (!%p481_p9)
}
  0x22   : > { %s485_s7 = scalar_lea.vmem %s673_s14, 64  ;;  %s568_s11 = smov [#allocation4]  }
  0x23   : > { %p486_p13 = scmp.ne.s32.totalorder %s673_s14, %s485_s7  ;;  %s490_s12 = sshll.u32 %s568_s11, 4  ;;  %s491_s12 = int_to_ptr.vmem [resolvable:$false] %s490_s12 }
  0x24   : > { %s492_s13 = scalar_lea.vmem %s491_s12, 128  ;;  %p493_p12 = scmp.lt.s32.totalorder %s673_s14, %s491_s12 }
  0x25   : > { %p488_p1 = pnand %p486_p13, %p472_p0  ;;  %p494_p3 = scmp.lt.s32.totalorder %s492_s13, %s485_s7 }
  0x27   : > { %p489_p11 = pneg %p488_p1  ;;  %p495_p4 = por %p494_p3, %p493_p12 }
  0x29   : > { %p496_p5 = pnand %p495_p4, %p489_p11 }
  0x2b   : > { %499 = shalt.err (!%p496_p5)
}
  0x2c   : > { %389 = dma.hbm_to_vmem [thread:$0]  (!%p679_p10), %s671_s17, 64, %s673_s14, %s175_s27  }
  0x2d   : > { %p772_p2 = scmp.lt.s32.totalorder %s566_s24, 5  ;;  %p773_p6 = scmp.ge.s32.totalorder %s566_s24, 1 }
  0x2f   : > { %p193_p0 = pnand %p773_p6, %p772_p2 }
  0x30   : > { %s198_s15 = sand.u32 (!%p193_p0), 1, %s542_s18  }
  0x31   : > { %196 = sbr.rel (%p193_p0) target bundleno = 345 (0x159), region = 36  ;;  %s378_s16 = sshll.u32 (!%p193_p0), %s198_s15, 2 }
  0x32   : > { %s199_s28 = scalar_lea.sflag (!%p193_p0), [#allocation5], %s198_s15  ;;  %s202_s5 = scalar_lea.vmem (!%p193_p0), [#allocation4], %s378_s16 }
  0x38   : > { %533 = dma.done.wait (%p655_p7), %s199_s28, 64  }
  0x39   : > { %535 = vsyncadd (%p655_p7), %s199_s28, 4294967232  ;;  %p226_p11 = scmp.lt.s32.totalorder %s554_s21, 1  ;;  %p380_p10 = scmp.ne.s32.totalorder %s550_s20, 0 }
  0x3a   : > { %vm234_vm0 = vcmask (!%p380_p10), 3072   ;;  %v569_v0 = vmov (!%p380_p10), 0.0  }
  0x3b   : > { %s788_s21 = smov (!%p226_p11, %s554_s21), 1  ;;  %233 = sbr.rel (%p380_p10) target bundleno = 66 (0x42), region = 44 }
  0x3c   : > { %s379_s14 = sshll.u32 %s788_s21, 2  ;;  %235 = vst.msk [vmem:[#allocation2] sm:$0xf] (!%p380_p10), %vm234_vm0, %v569_v0 }
  0x3d   : > { %s724_s27 = scalar_lea.vmem %s768_s4, %s379_s14 }
  0x42 PF: > { %v236_v1 = vld [vmem:[%s202_s5] sm:$0xf]  ;;  %vm239_vm1 = vcmask 1043456   ;;  %s237_s21 = sld [smem:[#allocation3]]  ;;  %vm262_vm2 = vcmask 3072   ;;  %p381_p7 = scmp.ne.s32.totalorder %s550_s20, 1 }
  0x43   : > { %v238_v2 = vmul.f32 %v236_v1, %v236_v1  ;;  %v257_v21 = vld [vmem:[#allocation2] sm:$0xf] }
  0x44   : > { %v276_v31 = vld [vmem:[%s766_s2] sm:$0xf] (!%p381_p7) }
  0x45   : > { %v240_v3 = vsel %vm239_vm1, %v238_v2, 0.0  ;;  %v278_v33 = vld [vmem:[%s767_s3] sm:$0xf] (!%p381_p7) }
  0x46   : > { %v241_v4 = vrot.slane %v240_v3, 4 }
  0x48   : > { %v242_v5 = vadd.f32 %v241_v4, %v240_v3  ;;  %v253_v15 = vstv %s237_s21 }
  0x4a   : > { %v243_v6 = vrot.slane %v242_v5, 2 }
  0x4c   : > { %v244_v7 = vadd.f32 %v243_v6, %v242_v5 }
  0x4e   : > { %v245_v8 = vrot.slane %v244_v7, 1 }
  0x50   : > { %v246_v9 = vadd.f32 %v245_v8, %v244_v7 }
  0x52   : > { %v247_v10 = vmax.f32 %v246_v9, 1e-24 }
  0x54   : > { %456 = vrsqrt.f32 %v247_v10 }
  0x5e   : > { %v457_v11 = vpop.eup %456 }
  0x5f   : > { %v249_v12 = vmul.f32 %v457_v11, %v236_v1 }
  0x61   : > { %v250_v13 = vmax.f32 %v249_v12, 1e-06 }
  0x63   : > { %458 = vlog2.f32 %v250_v13 }
  0x6d   : > { %v459_v14 = vpop.eup %458 }
  0x6e   : > { %v252_v16 = vmul.f32 0.6931472, %v459_v14 }
  0x70   : > { %v254_v17 = vmul.f32 %v253_v15, %v252_v16 }
  0x72   : > { %v255_v18 = vmul.f32 1.442695, %v254_v17 }
  0x74   : > { %460 = vpow2.f32 %v255_v18 }
  0x75   : > { %462 = vrcp.f32 (!%p381_p7), %v253_v15 }
  0x7e   : > { %v461_v19 = vpop.eup %460 }
  0x7f   : > { %v258_v20 = vsel %vm239_vm1, %v461_v19, 0.0  ;;  %v463_v26 = vpop.eup (!%p381_p7), %462 }
  0x80   : > { %259 = vadd.xlane.f32.xlu0 %v258_v20 }
 0x10a   : > { %267 = sbr.rel (%p381_p7) target bundleno = 345 (0x159), region = 48 }
 0x10d   : > { %v260_v22 = vpop.xlane.xlu0 %259 }
 0x10e   : > { %v261_v23 = vadd.f32 %v260_v22, %v257_v21 }
 0x110   : > { %263 = vst.msk [vmem:[#allocation2] sm:$0xf] %vm262_vm2, %v261_v23 }
 0x117   : > { %v268_v24 = vld [vmem:[#allocation2] sm:$0xf] }
 0x118   : > { %v269_v25 = vmul.f32 0.00390625, %v268_v24 }
 0x11a   : > { %464 = vlog2.f32 %v269_v25 }
 0x124   : > { %v465_v27 = vpop.eup %464 }
 0x125   : > { %v271_v28 = vmul.f32 0.6931472, %v465_v27 }
 0x127   : > { %v273_v29 = vmul.f32 %v463_v26, %v271_v28 }
 0x129   : > { %v274_v30 = vmul.f32 1.442695, %v273_v29 }
 0x12b   : > { %466 = vpow2.f32 %v274_v30 }
 0x135   : > { %v467_v32 = vpop.eup %466 }
 0x136   : > { %v277_v34 = vmul.f32 %v467_v32, %v276_v31 }
 0x138   : > { %v279_v35 = vadd.f32 %v278_v33, %v277_v34 }
 0x13a   : > { %v280_v36 = vmul.f32 %v279_v35, %v279_v35 }
 0x13c   : > { %v281_v37 = vsel %vm262_vm2, %v280_v36, 0.0 }
 0x13d   : > { %v282_v38 = vrot.slane %v281_v37, 4 }
 0x13f   : > { %v283_v39 = vadd.f32 %v282_v38, %v281_v37 }
 0x141   : > { %v284_v40 = vrot.slane %v283_v39, 2 }
 0x143   : > { %v285_v41 = vadd.f32 %v284_v40, %v283_v39 }
 0x145   : > { %v286_v42 = vrot.slane %v285_v41, 1 }
 0x147   : > { %v287_v43 = vadd.f32 %v286_v42, %v285_v41 }
 0x149   : > { %v288_v44 = vmax.f32 %v287_v43, 1e-24 }
 0x14b   : > { %468 = vrsqrt.f32 %v288_v44 }
 0x155   : > { %v469_v45 = vpop.eup %468 }
 0x156   : > { %v290_v46 = vmul.f32 %v469_v45, %v279_v35 }
 0x158   : > { %291 = vst.msk [vmem:[%s724_s27] sm:$0xf] %vm262_vm2, %v290_v46 }
 0x159 PF: > { %s18_s24 = sadd.s32 1, %s566_s24   ;;  %s774_s17 = smov %s542_s18 }
 0x15a   : > { %p15_p12 = scmp.ge.s32.totalorder %s18_s24, 6   ;;  %s775_s18 = smov %s546_s19 }
 0x15b   : > { %s776_s19 = smov %s665_s10  ;;  %s777_s20 = smov %s558_s22 }
 0x15c   : > { %s778_s21 = smov %s562_s23  ;;  %s779_s22 = smov %s782_s25 }
 0x15d   : > { %s780_s23 = smov %s786_s26  ;;  %17 = sbr.rel (!%p15_p12) target bundleno = 7 (0x7), region = 84 }
 0x164   :  { %311 = vsyncpa [#allocation5], 1 }
 0x165   :  { %313 = vsyncpa [#allocation5 + $0x1], 1 }

</bundles_post_ra>
